<compile_context>
chip_gen: v7x
topology: tpu7x:2x2x1
jax: 0.10.0
libtpu: 0.0.40
codegen_flags: <defaults>
</compile_context>

<pallas_src>
import functools

import jax
import jax.numpy as jnp
from jax import lax
from jax.experimental import pallas as pl
from jax.experimental.pallas import tpu as pltpu


def _pick_tile(n, target, align):
    """Largest tile <= target that divides n and is a multiple of `align`
    (or the full dimension n, which is always legal for a BlockSpec)."""
    if n <= target:
        return n
    t = (target // align) * align
    while t >= align:
        if n % t == 0:
            return t
        t -= align
    return n  # fall back to the full (untiled) dimension


def _aggregate_kernel(heads, attn_ref, xk_ref, xq_ref, w_ref, out_ref, acc_ref):
    # attn_ref: (heads, TI, TJ) bf16      xk_ref: (TJ, C) f32 (key-tile tokens)
    # xq_ref:   (TI, C) f32 (query-tile tokens, for residual)
    # w_ref:    (heads, C, C) bf16 (gamma * Wv_h @ Wp_h)
    # out_ref:  (TI, C) f32               acc_ref: (TI, C) f32 VMEM scratch
    j = pl.program_id(2)

    @pl.when(j == 0)
    def _():
        acc_ref[...] = jnp.zeros_like(acc_ref)

    # bf16 MXU inputs, f32 accumulation.
    xk_bf = xk_ref[...].astype(jnp.bfloat16)                    # (TJ, C)

    # Unrolled head loop writing into the VMEM accumulator each iteration
    # (bounds vreg live ranges; no narrow-lane concatenate, no second GEMM).
    for h in range(heads):
        # fused per-head projected values for this key tile: (TJ, C)
        u = jnp.dot(xk_bf, w_ref[h], preferred_element_type=jnp.float32)
        # aggregate with this head's attention tile: (TI, TJ) @ (TJ, C)
        acc_ref[...] += jnp.dot(attn_ref[h], u.astype(jnp.bfloat16),
                                preferred_element_type=jnp.float32)

    @pl.when(j == pl.num_programs(2) - 1)
    def _():
        # residual add (gamma already folded into w) and store
        out_ref[...] = (xq_ref[...] + acc_ref[...]).astype(out_ref.dtype)


def aggregate_forward(attn, fmap, wv, wp, gamma, *, heads, dim_head,
                      tile_i=256, tile_j=512):
    B, C, H, W = fmap.shape
    N = H * W
    inner = heads * dim_head
    assert attn.shape == (B, heads, N, N)
    assert wv.shape == (C, inner) and wp.shape == (inner, C)

    # NCHW -> tokens-major channels-last (XLA glue outside the kernel)
    x = jnp.transpose(fmap, (0, 2, 3, 1)).reshape(B, N, C).astype(jnp.float32)

    # Stream attention in bf16: halves the dominant HBM traffic and feeds the
    # MXU at full bf16 rate on v6e/v7x.
    attn_bf = attn.astype(jnp.bfloat16)

    # Fold both 1x1 convs and gamma into one per-head (C, C) weight:
    #   out = x + sum_h attn_h @ (x @ (gamma * Wv_h @ Wp_h))
    wv_h = wv.reshape(C, heads, dim_head).transpose(1, 0, 2)     # (h, C, d)
    wp_h = wp.reshape(heads, dim_head, C)                        # (h, d, C)
    wf = (gamma[0] * jnp.einsum('hcd,hdk->hck', wv_h, wp_h)
          ).astype(jnp.bfloat16)                                 # (h, C, C)

    ti = _pick_tile(N, tile_i, 8)      # query-row tile (sublane-aligned)
    tj = _pick_tile(N, tile_j, 128)    # key tile (lane-aligned)
    grid = (B, N // ti, N // tj)

    kernel = functools.partial(_aggregate_kernel, heads)
    out = pl.pallas_call(
        kernel,
        out_shape=jax.ShapeDtypeStruct((B, N, C), jnp.float32),
        grid_spec=pltpu.PrefetchScalarGridSpec(
            num_scalar_prefetch=0,
            grid=grid,
            in_specs=[
                # attention tile (dominant stream)
                pl.BlockSpec((None, heads, ti, tj), lambda b, i, j: (b, 0, i, j)),
                # key-tile tokens (for v / projection)
                pl.BlockSpec((None, tj, C), lambda b, i, j: (b, j, 0)),
                # query-tile tokens (residual) -- constant across j
                pl.BlockSpec((None, ti, C), lambda b, i, j: (b, i, 0)),
                # fused per-head weights (tiny, resident)
                pl.BlockSpec((heads, C, C), lambda b, i, j: (0, 0, 0)),
            ],
            out_specs=pl.BlockSpec((None, ti, C), lambda b, i, j: (b, i, 0)),
            scratch_shapes=[pltpu.VMEM((ti, C), jnp.float32)],
        ),
        compiler_params=pltpu.CompilerParams(
            dimension_semantics=("parallel", "parallel", "arbitrary"),
            vmem_limit_bytes=32 * 1024 * 1024,
        ),
    )(attn_bf, x, x, wf)

    # back to NCHW
    return jnp.transpose(out.reshape(B, H, W, C), (0, 3, 1, 2))


def aggregate_reference(attn, fmap, wv, wp, gamma, *, heads, dim_head):
    """Pure-JAX f32 reference mirroring the PyTorch forward."""
    B, C, H, W = fmap.shape
    N = H * W
    x = jnp.transpose(fmap, (0, 2, 3, 1)).reshape(B, N, C)
    v = x @ wv                                                  # (B, N, inner)
    v = v.reshape(B, N, heads, dim_head).transpose(0, 2, 1, 3)  # (B, h, N, d)
    out = jnp.einsum('bhij,bhjd->bhid', attn, v)                # (B, h, N, d)
    out = out.transpose(0, 2, 1, 3).reshape(B, N, heads * dim_head)
    proj = out @ wp
    res = x + gamma[0] * proj
    return jnp.transpose(res.reshape(B, H, W, C), (0, 3, 1, 2))


if __name__ == "__main__":
    def run_case(B, C, H, W, heads, dim_head, key, **tile_kw):
        N = H * W
        inner = heads * dim_head
        k_fmap, k_attn, k_wv, k_wp = jax.random.split(key, 4)

        fmap = jax.random.normal(k_fmap, (B, C, H, W), jnp.float32)
        attn = jax.nn.softmax(
            jax.random.normal(k_attn, (B, heads, N, N), jnp.float32), axis=-1)
        # to_v Conv2d(dim, inner, 1, bias=False) weight stored pre-transposed
        # as (dim, inner); project Conv2d(inner, dim, 1, bias=False) as (inner, dim).
        wv = 0.1 * jax.random.normal(k_wv, (C, inner), jnp.float32)
        wp = 0.1 * jax.random.normal(k_wp, (inner, C), jnp.float32)
        # PyTorch inits gamma = 0; use a nonzero value so the aggregation path
        # is actually exercised by the check.
        gamma = jnp.array([0.5], jnp.float32)

        out = aggregate_forward(attn, fmap, wv, wp, gamma,
                                heads=heads, dim_head=dim_head, **tile_kw)
        out = jax.block_until_ready(out)
        ref = aggregate_reference(attn, fmap, wv, wp, gamma,
                                  heads=heads, dim_head=dim_head)
        assert out.shape == fmap.shape
        max_err = float(jnp.max(jnp.abs(out - ref)))
        assert jnp.allclose(out, ref, atol=1e-2, rtol=1e-2), \
            "mismatch vs reference, max abs err = %g" % max_err

    key = jax.random.PRNGKey(0)
    k1, k2 = jax.random.split(key)

    # Module config dim=32, heads=4, dim_head=16 -> inner=64 != dim (project path).
    run_case(B=2, C=32, H=8, W=8, heads=4, dim_head=16, key=k1)

    # Larger spatial size with forced small tiles to exercise the query-tile
    # grid and the key-tile accumulation (grid = (2, 4, 2)).
    run_case(B=2, C=32, H=16, W=16, heads=2, dim_head=32, key=k2,
             tile_i=64, tile_j=128)

    print("KERNEL_OK")
</pallas_src>

<mosaic_0001>
module attributes {stable_mosaic.version = 11 : i64} {
  func.func @_aggregate_kernel(%arg0: i32, %arg1: i32, %arg2: i32, %arg3: memref<1x4x64x64xbf16, #tpu.memory_space<vmem>>, %arg4: memref<1x64x32xf32, #tpu.memory_space<vmem>>, %arg5: memref<1x64x32xf32, #tpu.memory_space<vmem>>, %arg6: memref<4x32x32xbf16, #tpu.memory_space<vmem>>, %arg7: memref<1x64x32xf32, #tpu.memory_space<vmem>>, %arg8: memref<64x32xf32, #tpu.memory_space<vmem>>) attributes {dimension_semantics = [#tpu.dimension_semantics<parallel>, #tpu.dimension_semantics<parallel>, #tpu.dimension_semantics<arbitrary>], iteration_bounds = array<i64: 2, 1, 1>, scalar_prefetch = 0 : i64, scratch_operands = 1 : i64, tpu.core_type = #tpu.core_type<tc>, window_params = [{transform_indices = @transform_0, window_bounds = array<i64: 1, 4, 64, 64>}, {transform_indices = @transform_1, window_bounds = array<i64: 1, 64, 32>}, {transform_indices = @transform_2, window_bounds = array<i64: 1, 64, 32>}, {pipeline_mode = #tpu.pipeline_mode<synchronous>, transform_indices = @transform_3, window_bounds = array<i64: 4, 32, 32>}, {transform_indices = @transform_4, window_bounds = array<i64: 1, 64, 32>}]} {
    %c0_i32 = arith.constant 0 : i32
    %0 = arith.cmpi eq, %arg2, %c0_i32 : i32
    %1 = arith.extui %0 : i1 to i32
    %c0_i32_0 = arith.constant 0 : i32
    %2 = arith.cmpi ne, %1, %c0_i32_0 : i32
    scf.if %2 {
      %cst_53 = arith.constant 0.000000e+00 : f32
      %49 = vector.broadcast %cst_53 : f32 to vector<64x32xf32>
      %c0_54 = arith.constant 0 : index
      %c0_55 = arith.constant 0 : index
      %50 = vector.load %arg8[%c0_54, %c0_55] : memref<64x32xf32, #tpu.memory_space<vmem>>, vector<64x32xf32>
      tpu.vector_store %arg8[%c0_54, %c0_55], %49 {strides = array<i32>} : memref<64x32xf32, #tpu.memory_space<vmem>>, vector<64x32xf32>,
    } else {
    }
    %c0 = arith.constant 0 : index
    %c0_1 = arith.constant 0 : index
    %c0_2 = arith.constant 0 : index
    %3 = vector.load %arg4[%c0, %c0_1, %c0_2] : memref<1x64x32xf32, #tpu.memory_space<vmem>>, vector<1x64x32xf32>
    %4 = vector.shape_cast %3 : vector<1x64x32xf32> to vector<64x32xf32>
    %5 = arith.truncf %4 : vector<64x32xf32> to vector<64x32xbf16>
    %c0_3 = arith.constant 0 : index
    %c0_4 = arith.constant 0 : index
    %c0_5 = arith.constant 0 : index
    %6 = vector.load %arg6[%c0_3, %c0_4, %c0_5] : memref<4x32x32xbf16, #tpu.memory_space<vmem>>, vector<1x32x32xbf16>
    %7 = vector.shape_cast %6 : vector<1x32x32xbf16> to vector<32x32xbf16>
    %cst = arith.constant dense<0.000000e+00> : vector<64x32xf32>
    %8 = tpu.matmul %5, %7, %cst {dimension_numbers = #tpu.dot_dimension_numbers<[1], [0], [0], [1], [0, 0, 1, 1], [], []>} : vector<64x32xbf16>, vector<32x32xbf16>, vector<64x32xf32> -> vector<64x32xf32>
    %c0_6 = arith.constant 0 : index
    %c0_7 = arith.constant 0 : index
    %9 = vector.load %arg8[%c0_6, %c0_7] : memref<64x32xf32, #tpu.memory_space<vmem>>, vector<64x32xf32>
    %c0_8 = arith.constant 0 : index
    %c0_9 = arith.constant 0 : index
    %c0_10 = arith.constant 0 : index
    %c0_11 = arith.constant 0 : index
    %10 = vector.load %arg3[%c0_8, %c0_9, %c0_10, %c0_11] : memref<1x4x64x64xbf16, #tpu.memory_space<vmem>>, vector<1x1x64x64xbf16>
    %11 = vector.shape_cast %10 : vector<1x1x64x64xbf16> to vector<64x64xbf16>
    %12 = arith.truncf %8 : vector<64x32xf32> to vector<64x32xbf16>
    %cst_12 = arith.constant dense<0.000000e+00> : vector<64x32xf32>
    %13 = tpu.matmul %11, %12, %cst_12 {dimension_numbers = #tpu.dot_dimension_numbers<[1], [0], [0], [1], [0, 0, 1, 1], [], []>} : vector<64x64xbf16>, vector<64x32xbf16>, vector<64x32xf32> -> vector<64x32xf32>
    %14 = arith.addf %9, %13 : vector<64x32xf32>
    %c0_13 = arith.constant 0 : index
    %c0_14 = arith.constant 0 : index
    %15 = vector.load %arg8[%c0_13, %c0_14] : memref<64x32xf32, #tpu.memory_space<vmem>>, vector<64x32xf32>
    tpu.vector_store %arg8[%c0_13, %c0_14], %14 {strides = array<i32>} : memref<64x32xf32, #tpu.memory_space<vmem>>, vector<64x32xf32>,
    %c1 = arith.constant 1 : index
    %c0_15 = arith.constant 0 : index
    %c0_16 = arith.constant 0 : index
    %16 = vector.load %arg6[%c1, %c0_15, %c0_16] : memref<4x32x32xbf16, #tpu.memory_space<vmem>>, vector<1x32x32xbf16>
    %17 = vector.shape_cast %16 : vector<1x32x32xbf16> to vector<32x32xbf16>
    %cst_17 = arith.constant dense<0.000000e+00> : vector<64x32xf32>
    %18 = tpu.matmul %5, %17, %cst_17 {dimension_numbers = #tpu.dot_dimension_numbers<[1], [0], [0], [1], [0, 0, 1, 1], [], []>} : vector<64x32xbf16>, vector<32x32xbf16>, vector<64x32xf32> -> vector<64x32xf32>
    %c0_18 = arith.constant 0 : index
    %c0_19 = arith.constant 0 : index
    %19 = vector.load %arg8[%c0_18, %c0_19] : memref<64x32xf32, #tpu.memory_space<vmem>>, vector<64x32xf32>
    %c0_20 = arith.constant 0 : index
    %c1_21 = arith.constant 1 : index
    %c0_22 = arith.constant 0 : index
    %c0_23 = arith.constant 0 : index
    %20 = vector.load %arg3[%c0_20, %c1_21, %c0_22, %c0_23] : memref<1x4x64x64xbf16, #tpu.memory_space<vmem>>, vector<1x1x64x64xbf16>
    %21 = vector.shape_cast %20 : vector<1x1x64x64xbf16> to vector<64x64xbf16>
    %22 = arith.truncf %18 : vector<64x32xf32> to vector<64x32xbf16>
    %cst_24 = arith.constant dense<0.000000e+00> : vector<64x32xf32>
    %23 = tpu.matmul %21, %22, %cst_24 {dimension_numbers = #tpu.dot_dimension_numbers<[1], [0], [0], [1], [0, 0, 1, 1], [], []>} : vector<64x64xbf16>, vector<64x32xbf16>, vector<64x32xf32> -> vector<64x32xf32>
    %24 = arith.addf %19, %23 : vector<64x32xf32>
    %c0_25 = arith.constant 0 : index
    %c0_26 = arith.constant 0 : index
    %25 = vector.load %arg8[%c0_25, %c0_26] : memref<64x32xf32, #tpu.memory_space<vmem>>, vector<64x32xf32>
    tpu.vector_store %arg8[%c0_25, %c0_26], %24 {strides = array<i32>} : memref<64x32xf32, #tpu.memory_space<vmem>>, vector<64x32xf32>,
    %c2 = arith.constant 2 : index
    %c0_27 = arith.constant 0 : index
    %c0_28 = arith.constant 0 : index
    %26 = vector.load %arg6[%c2, %c0_27, %c0_28] : memref<4x32x32xbf16, #tpu.memory_space<vmem>>, vector<1x32x32xbf16>
    %27 = vector.shape_cast %26 : vector<1x32x32xbf16> to vector<32x32xbf16>
    %cst_29 = arith.constant dense<0.000000e+00> : vector<64x32xf32>
    %28 = tpu.matmul %5, %27, %cst_29 {dimension_numbers = #tpu.dot_dimension_numbers<[1], [0], [0], [1], [0, 0, 1, 1], [], []>} : vector<64x32xbf16>, vector<32x32xbf16>, vector<64x32xf32> -> vector<64x32xf32>
    %c0_30 = arith.constant 0 : index
    %c0_31 = arith.constant 0 : index
    %29 = vector.load %arg8[%c0_30, %c0_31] : memref<64x32xf32, #tpu.memory_space<vmem>>, vector<64x32xf32>
    %c0_32 = arith.constant 0 : index
    %c2_33 = arith.constant 2 : index
    %c0_34 = arith.constant 0 : index
    %c0_35 = arith.constant 0 : index
    %30 = vector.load %arg3[%c0_32, %c2_33, %c0_34, %c0_35] : memref<1x4x64x64xbf16, #tpu.memory_space<vmem>>, vector<1x1x64x64xbf16>
    %31 = vector.shape_cast %30 : vector<1x1x64x64xbf16> to vector<64x64xbf16>
    %32 = arith.truncf %28 : vector<64x32xf32> to vector<64x32xbf16>
    %cst_36 = arith.constant dense<0.000000e+00> : vector<64x32xf32>
    %33 = tpu.matmul %31, %32, %cst_36 {dimension_numbers = #tpu.dot_dimension_numbers<[1], [0], [0], [1], [0, 0, 1, 1], [], []>} : vector<64x64xbf16>, vector<64x32xbf16>, vector<64x32xf32> -> vector<64x32xf32>
    %34 = arith.addf %29, %33 : vector<64x32xf32>
    %c0_37 = arith.constant 0 : index
    %c0_38 = arith.constant 0 : index
    %35 = vector.load %arg8[%c0_37, %c0_38] : memref<64x32xf32, #tpu.memory_space<vmem>>, vector<64x32xf32>
    tpu.vector_store %arg8[%c0_37, %c0_38], %34 {strides = array<i32>} : memref<64x32xf32, #tpu.memory_space<vmem>>, vector<64x32xf32>,
    %c3 = arith.constant 3 : index
    %c0_39 = arith.constant 0 : index
    %c0_40 = arith.constant 0 : index
    %36 = vector.load %arg6[%c3, %c0_39, %c0_40] : memref<4x32x32xbf16, #tpu.memory_space<vmem>>, vector<1x32x32xbf16>
    %37 = vector.shape_cast %36 : vector<1x32x32xbf16> to vector<32x32xbf16>
    %cst_41 = arith.constant dense<0.000000e+00> : vector<64x32xf32>
    %38 = tpu.matmul %5, %37, %cst_41 {dimension_numbers = #tpu.dot_dimension_numbers<[1], [0], [0], [1], [0, 0, 1, 1], [], []>} : vector<64x32xbf16>, vector<32x32xbf16>, vector<64x32xf32> -> vector<64x32xf32>
    %c0_42 = arith.constant 0 : index
    %c0_43 = arith.constant 0 : index
    %39 = vector.load %arg8[%c0_42, %c0_43] : memref<64x32xf32, #tpu.memory_space<vmem>>, vector<64x32xf32>
    %c0_44 = arith.constant 0 : index
    %c3_45 = arith.constant 3 : index
    %c0_46 = arith.constant 0 : index
    %c0_47 = arith.constant 0 : index
    %40 = vector.load %arg3[%c0_44, %c3_45, %c0_46, %c0_47] : memref<1x4x64x64xbf16, #tpu.memory_space<vmem>>, vector<1x1x64x64xbf16>
    %41 = vector.shape_cast %40 : vector<1x1x64x64xbf16> to vector<64x64xbf16>
    %42 = arith.truncf %38 : vector<64x32xf32> to vector<64x32xbf16>
    %cst_48 = arith.constant dense<0.000000e+00> : vector<64x32xf32>
    %43 = tpu.matmul %41, %42, %cst_48 {dimension_numbers = #tpu.dot_dimension_numbers<[1], [0], [0], [1], [0, 0, 1, 1], [], []>} : vector<64x64xbf16>, vector<64x32xbf16>, vector<64x32xf32> -> vector<64x32xf32>
    %44 = arith.addf %39, %43 : vector<64x32xf32>
    %c0_49 = arith.constant 0 : index
    %c0_50 = arith.constant 0 : index
    %45 = vector.load %arg8[%c0_49, %c0_50] : memref<64x32xf32, #tpu.memory_space<vmem>>, vector<64x32xf32>
    tpu.vector_store %arg8[%c0_49, %c0_50], %44 {strides = array<i32>} : memref<64x32xf32, #tpu.memory_space<vmem>>, vector<64x32xf32>,
    %c0_i32_51 = arith.constant 0 : i32
    %46 = arith.cmpi eq, %arg2, %c0_i32_51 : i32
    %47 = arith.extui %46 : i1 to i32
    %c0_i32_52 = arith.constant 0 : i32
    %48 = arith.cmpi ne, %47, %c0_i32_52 : i32
    scf.if %48 {
      %c0_53 = arith.constant 0 : index
      %c0_54 = arith.constant 0 : index
      %c0_55 = arith.constant 0 : index
      %49 = vector.load %arg5[%c0_53, %c0_54, %c0_55] : memref<1x64x32xf32, #tpu.memory_space<vmem>>, vector<1x64x32xf32>
      %50 = vector.shape_cast %49 : vector<1x64x32xf32> to vector<64x32xf32>
      %c0_56 = arith.constant 0 : index
      %c0_57 = arith.constant 0 : index
      %51 = vector.load %arg8[%c0_56, %c0_57] : memref<64x32xf32, #tpu.memory_space<vmem>>, vector<64x32xf32>
      %52 = arith.addf %50, %51 : vector<64x32xf32>
      %c0_58 = arith.constant 0 : index
      %c0_59 = arith.constant 0 : index
      %c0_60 = arith.constant 0 : index
      %53 = vector.load %arg7[%c0_58, %c0_59, %c0_60] : memref<1x64x32xf32, #tpu.memory_space<vmem>>, vector<1x64x32xf32>
      %54 = vector.shape_cast %53 : vector<1x64x32xf32> to vector<64x32xf32>
      %55 = vector.shape_cast %52 : vector<64x32xf32> to vector<1x64x32xf32>
      tpu.vector_store %arg7[%c0_58, %c0_59, %c0_60], %55 {strides = array<i32>} : memref<1x64x32xf32, #tpu.memory_space<vmem>>, vector<1x64x32xf32>,
    } else {
    }
    return
  }
  func.func @transform_0(%arg0: i32, %arg1: i32, %arg2: i32) -> (i32, i32, i32, i32) {
    %c0_i32 = arith.constant 0 : i32
    %c0_i32_0 = arith.constant 0 : i32
    return %arg0, %c0_i32, %arg1, %arg2 : i32, i32, i32, i32
  }
  func.func @transform_1(%arg0: i32, %arg1: i32, %arg2: i32) -> (i32, i32, i32) {
    %c0_i32 = arith.constant 0 : i32
    %c0_i32_0 = arith.constant 0 : i32
    return %arg0, %arg2, %c0_i32 : i32, i32, i32
  }
  func.func @transform_2(%arg0: i32, %arg1: i32, %arg2: i32) -> (i32, i32, i32) {
    %c0_i32 = arith.constant 0 : i32
    %c0_i32_0 = arith.constant 0 : i32
    return %arg0, %arg1, %c0_i32 : i32, i32, i32
  }
  func.func @transform_3(%arg0: i32, %arg1: i32, %arg2: i32) -> (i32, i32, i32) {
    %c0_i32 = arith.constant 0 : i32
    %c0_i32_0 = arith.constant 0 : i32
    %c0_i32_1 = arith.constant 0 : i32
    %c0_i32_2 = arith.constant 0 : i32
    return %c0_i32, %c0_i32_0, %c0_i32_1 : i32, i32, i32
  }
  func.func @transform_4(%arg0: i32, %arg1: i32, %arg2: i32) -> (i32, i32, i32) {
    %c0_i32 = arith.constant 0 : i32
    %c0_i32_0 = arith.constant 0 : i32
    return %arg0, %arg1, %c0_i32 : i32, i32, i32
  }
}

</mosaic_0001>

<bundles_post_ra>
// kernel: tpu_custom_call.1
= control target key start
LH: loop header
LB: loop body
LE: loop exit
PB: predicated region body
PF: predicated region fallthrough
CT: control target
= control target key end

     0   :  { %s1771_s15 = smov 0   ;;  %s1773_s16 = smov 0   ;;  %s1957_s0 = inlined_call_operand.vmem [shape: bf16[2,4,64,64], index: 0, kind: input, shape index: {}]   ;;  %s1958_s1 = inlined_call_operand.vmem [shape: f32[2,64,32], index: 1, kind: input, shape index: {}]   ;;  %s1959_s2 = inlined_call_operand.vmem [shape: f32[2,64,32], index: 2, kind: input, shape index: {}]   ;;  %s1960_s3 = inlined_call_operand.vmem [shape: bf16[4,32,32], index: 3, kind: input, shape index: {}]   ;;  %s1961_s4 = inlined_call_operand.vmem [shape: f32[2,64,32], index: 4, kind: output, shape index: {}]  }
   0x1   :  { %s1775_s17 = smov 0  }
   0x2 LB: > { %s33_s18 = sadd.s32 1, %s1739_s16  ;;  %p1397_p0 = scmp.ge.s32.totalorder %s1743_s17, 1  ;;  %s1743_s17 = sphi %s1775_s17, %s14_s17   ;;  %s1739_s16 = sphi %s1773_s16, %s1963_s16   ;;  %s1735_s15 = sphi %s1771_s15, %s1962_s15  }
   0x3   : > { %p35_p1 = scmp.ge.s32.totalorder %s33_s18, 2  ;;  %p229_p2 = scmp.lt.s32.totalorder %s1743_s17, 3 }
   0x5   : > { %s1965_s18 = smov (%p35_p1, %s33_s18), 0  ;;  %p230_p3 = pnand %p1397_p0, %p229_p2 }
   0x6   : > { %v1697_v0 = vld [vmem:[%s1960_s3] sm:$0xff] (!%p230_p3)   ;;  %p285_p4 = scmp.lt.s32.totalorder (!%p230_p3), %s1735_s15, 1  ;;  %v1698_v1 = vld [vmem:[%s1960_s3 + $0x8] sm:$0xff] (!%p230_p3)   ;;  %v1699_v2 = vld [vmem:[%s1960_s3 + $0x10] sm:$0xff] (!%p230_p3)   ;;  %vm332_vm0 = vcmask (!%p230_p3), 261120   ;;  %vm487_vm1 = vcmask (!%p230_p3), 523264  }
   0x7   : > { %233 = sbr.rel (%p230_p3) target bundleno = 538 (0x21a), region = 36  ;;  %1560 = vmatprep.subr.bf16.mxu0 (!%p230_p3), %v1697_v0  ;;  %v1700_v12 = vld [vmem:[%s1960_s3 + $0x18] sm:$0xff] (!%p230_p3)   ;;  %v1701_v15 = vld [vmem:[%s1960_s3 + $0x20] sm:$0xff] (!%p230_p3)   ;;  %v1702_v17 = vld [vmem:[%s1960_s3 + $0x28] sm:$0xff] (!%p230_p3)   ;;  %v1745_v21 = vmov (!%p230_p3), 0.0  }
   0x8   : > { %1561 = vmatpush3.bf16.msra.mxu0 (!%p230_p3), %v1697_v0  ;;  %v1703_v18 = vld [vmem:[%s1960_s3 + $0x30] sm:$0xff] (!%p230_p3)   ;;  %v1704_v19 = vld [vmem:[%s1960_s3 + $0x38] sm:$0xff] (!%p230_p3)   ;;  %335 = vst.msk [vmem:[#allocation2 + $0x10] sm:$0xff] (!%p230_p3), %vm332_vm0, %v1745_v21  ;;  %333 = vst.msk [vmem:[#allocation2] sm:$0xff] (!%p230_p3), %vm332_vm0, %v1745_v21 }
   0x9   : > { %1562 = vmatprep.subr.bf16.mxu0 (!%p230_p3), %v1698_v1  ;;  %334 = vst.msk [vmem:[#allocation2 + $0x8] sm:$0xff] (!%p230_p3), %vm332_vm0, %v1745_v21  ;;  %336 = vst.msk [vmem:[#allocation2 + $0x18] sm:$0xff] (!%p230_p3), %vm332_vm0, %v1745_v21 }
   0xa   : > { %337 = vst.msk [vmem:[#allocation2 + $0x20] sm:$0xff] (!%p230_p3), %vm332_vm0, %v1745_v21  ;;  %338 = vst.msk [vmem:[#allocation2 + $0x28] sm:$0xff] (!%p230_p3), %vm332_vm0, %v1745_v21 }
   0xb   : > { %339 = vst.msk [vmem:[#allocation2 + $0x30] sm:$0xff] (!%p230_p3), %vm332_vm0, %v1745_v21  ;;  %340 = vst.msk [vmem:[#allocation2 + $0x38] sm:$0xff] (!%p230_p3), %vm332_vm0, %v1745_v21 }
   0xc   : > { %1563 = vmatpush3.bf16.msra.mxu0 (!%p230_p3), %v1698_v1 }
   0xd   : > { %1588 = vmatprep.subr.bf16.mxu0 (!%p230_p3), %v1699_v2 }
   0xe   : > { %s1967_s15 = smov (!%p285_p4, %s1735_s15), 1 }
   0xf   : > { %s1795_s23 = sshll.u32 %s1967_s15, 6  ;;  %s1500_s29 = sshll.u32 %s1967_s15, 7  ;;  %v449_v21 = vld [vmem:[#allocation2 + $0x10] sm:$0xff] }
  0x10   : > { %s305_s28 = scalar_lea.vmem %s1958_s1, %s1795_s23  ;;  %s1811_s8 = scalar_lea.vmem %s1957_s0, %s1500_s29 }
  0x11   : > { %v341_v3 = vld [vmem:[%s305_s28] sm:$0xff]  ;;  %v342_v4 = vld [vmem:[%s305_s28 + $0x8] sm:$0xff]  ;;  %v343_v5 = vld [vmem:[%s305_s28 + $0x10] sm:$0xff]  ;;  %s1910_s22 = scalar_lea.vmem %s1959_s2, %s1795_s23  ;;  %s1920_s26 = scalar_lea.vmem %s1961_s4, %s1795_s23 }
  0x12   : > { %v349_v6 = vpack.c.bf16 %v342_v4, %v341_v3  ;;  %v344_v7 = vld [vmem:[%s305_s28 + $0x18] sm:$0xff]  ;;  %v345_v8 = vld [vmem:[%s305_s28 + $0x20] sm:$0xff]  ;;  %v346_v9 = vld [vmem:[%s305_s28 + $0x28] sm:$0xff] }
  0x13   : > { %v350_v10 = vpack.c.bf16 %v344_v7, %v343_v5  ;;  %v351_v11 = vpack.c.bf16 %v346_v9, %v345_v8  ;;  %v347_v13 = vld [vmem:[%s305_s28 + $0x30] sm:$0xff]  ;;  %v348_v14 = vld [vmem:[%s305_s28 + $0x38] sm:$0xff]  ;;  %v1705_v20 = vld [vmem:[%s1811_s8] sm:$0xff]  }
  0x14   : > { %1564 = vmatprep.mubr.msk.bf16.mxu0 %vm332_vm0, %v349_v6  ;;  %v352_v16 = vpack.c.bf16 %v348_v14, %v347_v13  ;;  %1580 = vmatprep.mubr.msk.bf16.mxu1 %vm487_vm1, %v1705_v20  ;;  %v1706_v37 = vld [vmem:[%s1811_s8 + $0x8] sm:$0xff]   ;;  %v1707_v40 = vld [vmem:[%s1811_s8 + $0x10] sm:$0xff]   ;;  %v1708_v45 = vld [vmem:[%s1811_s8 + $0x18] sm:$0xff]  }
  0x15   : > { %1565 = vmatmul.mubr.msk.bf16.vlgmr.msra.gmra.mrb[0].mxu0 %vm332_vm0, %v350_v10  ;;  %v1709_v48 = vld [vmem:[%s1811_s8 + $0x20] sm:$0xff]   ;;  %v1710_v53 = vld [vmem:[%s1811_s8 + $0x28] sm:$0xff]   ;;  %v1711_v56 = vld [vmem:[%s1811_s8 + $0x30] sm:$0xff]  }
  0x16   : > { %1589 = vmatpush3.bf16.msra.mxu0 %v1699_v2  ;;  %1568 = vmatprep.mubr.msk.bf16.mxu0 %vm332_vm0, %v351_v11  ;;  %v1712_v61 = vld [vmem:[%s1811_s8 + $0x38] sm:$0xff]   ;;  %v1713_v0 = vld [vmem:[%s1811_s8 + $0x40] sm:$0xff]   ;;  %v1714_v5 = vld [vmem:[%s1811_s8 + $0x48] sm:$0xff]  }
  0x17   : > { %1590 = vmatprep.subr.bf16.mxu0 %v1700_v12  ;;  %v1715_v8 = vld [vmem:[%s1811_s8 + $0x50] sm:$0xff]   ;;  %v1716_v13 = vld [vmem:[%s1811_s8 + $0x58] sm:$0xff]  }
  0x18   : > { %v1720_v20 = vld [vmem:[%s1811_s8 + $0x78] sm:$0xff]  }
  0x1a   : > { %1591 = vmatpush3.bf16.msra.mxu0 %v1700_v12 }
  0x1b   : > { %1616 = vmatprep.subr.bf16.mxu0 %v1701_v15 }
  0x1d   : > { %1569 = vmatmul.mubr.msk.bf16.gmra.mrb[4].mxu0 %vm332_vm0, %v352_v16 }
  0x1e   : > { %1592 = vmatprep.mubr.msk.bf16.mxu0 %vm332_vm0, %v349_v6 }
  0x25   : > { %1593 = vmatmul.mubr.msk.bf16.vlgmr.msra.gmra.mrb[8].mxu0 %vm332_vm0, %v350_v10 }
  0x26   : > { %1617 = vmatpush3.bf16.msra.mxu0 %v1701_v15  ;;  %1596 = vmatprep.mubr.msk.bf16.mxu0 %vm332_vm0, %v351_v11 }
  0x27   : > { %1618 = vmatprep.subr.bf16.mxu0 %v1702_v17 }
  0x2a   : > { %1619 = vmatpush3.bf16.msra.mxu0 %v1702_v17 }
  0x2b   : > { %1644 = vmatprep.subr.bf16.mxu0 %v1703_v18 }
  0x2d   : > { %1597 = vmatmul.mubr.msk.bf16.gmra.mrb[12].mxu0 %vm332_vm0, %v352_v16 }
  0x2e   : > { %1620 = vmatprep.mubr.msk.bf16.mxu0 %vm332_vm0, %v349_v6 }
  0x35   : > { %1621 = vmatmul.mubr.msk.bf16.vlgmr.msra.gmra.mrb[16].mxu0 %vm332_vm0, %v350_v10 }
  0x36   : > { %1645 = vmatpush3.bf16.msra.mxu0 %v1703_v18  ;;  %1624 = vmatprep.mubr.msk.bf16.mxu0 %vm332_vm0, %v351_v11  ;;  %v1718_v18 = vld [vmem:[%s1811_s8 + $0x68] sm:$0xff]  }
  0x37   : > { %1646 = vmatprep.subr.bf16.mxu0 %v1704_v19 }
  0x3a   : > { %1647 = vmatpush3.bf16.msra.mxu0 %v1704_v19  ;;  %v1719_v19 = vld [vmem:[%s1811_s8 + $0x70] sm:$0xff]  }
  0x3d   : > { %1625 = vmatmul.mubr.msk.bf16.gmra.mrb[20].mxu0 %vm332_vm0, %v352_v16 }
  0x3e   : > { %1648 = vmatprep.mubr.msk.bf16.mxu0 %vm332_vm0, %v349_v6 }
  0x45   : > { %1649 = vmatmul.mubr.msk.bf16.vlgmr.msra.gmra.mrb[24].mxu0 %vm332_vm0, %v350_v10 }
  0x46   : > { %1652 = vmatprep.mubr.msk.bf16.mxu0 %vm332_vm0, %v351_v11 }
  0x4d   : > { %1653 = vmatmul.mubr.msk.bf16.gmra.mrb[28].mxu0 %vm332_vm0, %v352_v16  ;;  %v1717_v16 = vld [vmem:[%s1811_s8 + $0x60] sm:$0xff]  }
  0xe8   : > { %v1566_v22 = vpop.f32.mrb[0].mxu0 }
  0xe9   : > { %v416_v23 = vpop.f32.mrb[1].mxu0 }
  0xea   : > { %v1567_v24 = vpop.f32.mrb[2].mxu0 }
  0xeb   : > { %v464_v25 = vpack.c.bf16 %v1567_v24, %v1566_v22  ;;  %v419_v26 = vpop.f32.mrb[3].mxu0  ;;  %v447_v22 = vld [vmem:[#allocation2] sm:$0xff]  ;;  %v450_v24 = vld [vmem:[#allocation2 + $0x18] sm:$0xff] }
  0xec   : > { %v463_v27 = vpack.c.bf16 %v419_v26, %v416_v23 }
  0xee   : > { %1572 = vmatprep.subr.bf16.mxu1 %v463_v27 }
  0xef   : > { %1573 = vmatpush3.bf16.msra.mxu1 %v463_v27  ;;  %v448_v27 = vld [vmem:[#allocation2 + $0x8] sm:$0xff] }
  0xf0   : > { %v1570_v28 = vpop.f32.mrb[4].mxu0  ;;  %1574 = vmatprep.subr.bf16.mxu1 %v464_v25 }
  0xf1   : > { %v432_v29 = vpop.f32.mrb[5].mxu0 }
  0xf2   : > { %v1571_v30 = vpop.f32.mrb[6].mxu0 }
  0xf3   : > { %v466_v31 = vpack.c.bf16 %v1571_v30, %v1570_v28  ;;  %v435_v32 = vpop.f32.mrb[7].mxu0  ;;  %1575 = vmatpush3.bf16.msra.mxu1 %v464_v25 }
  0xf4   : > { %v465_v33 = vpack.c.bf16 %v435_v32, %v432_v29 }
  0xf6   : > { %1576 = vmatprep.subr.bf16.mxu1 %v465_v33 }
  0xf7   : > { %1577 = vmatpush3.bf16.msra.mxu1 %v465_v33  ;;  %v453_v33 = vld [vmem:[#allocation2 + $0x30] sm:$0xff] }
  0xf8   : > { %1578 = vmatprep.subr.bf16.mxu1 %v466_v31  ;;  %v1594_v34 = vpop.f32.mrb[8].mxu0 }
  0xf9   : > { %v632_v35 = vpop.f32.mrb[9].mxu0 }
  0xfa   : > { %v1595_v36 = vpop.f32.mrb[10].mxu0 }
  0xfb   : > { %v681_v38 = vpack.c.bf16 %v1595_v36, %v1594_v34  ;;  %1579 = vmatpush3.bf16.msra.mxu1 %v466_v31  ;;  %v635_v39 = vpop.f32.mrb[11].mxu0  ;;  %v451_v34 = vld [vmem:[#allocation2 + $0x20] sm:$0xff]  ;;  %v454_v36 = vld [vmem:[#allocation2 + $0x38] sm:$0xff] }
  0xfc   : > { %v680_v41 = vpack.c.bf16 %v635_v39, %v632_v35  ;;  %v452_v39 = vld [vmem:[#allocation2 + $0x28] sm:$0xff] }
  0xfe   : > { %1581 = vmatmul.mubr.msk.bf16.vlgmr.msra.gmra.mrb[0].mxu1 %vm487_vm1, %v1706_v37  ;;  %1600 = vmatprep.subr.bf16.mxu1 %v680_v41 }
  0xff   : > { %1601 = vmatpush3.bf16.msra.mxu1 %v680_v41  ;;  %1584 = vmatprep.mubr.msk.bf16.mxu1 %vm487_vm1, %v1707_v40 }
 0x100   : > { %v1598_v42 = vpop.f32.mrb[12].mxu0  ;;  %1602 = vmatprep.subr.bf16.mxu1 %v681_v38 }
 0x101   : > { %v648_v43 = vpop.f32.mrb[13].mxu0 }
 0x102   : > { %v1599_v44 = vpop.f32.mrb[14].mxu0 }
 0x103   : > { %v683_v46 = vpack.c.bf16 %v1599_v44, %v1598_v42  ;;  %v651_v47 = vpop.f32.mrb[15].mxu0  ;;  %1603 = vmatpush3.bf16.msra.mxu1 %v681_v38 }
 0x104   : > { %v682_v49 = vpack.c.bf16 %v651_v47, %v648_v43 }
 0x106   : > { %1585 = vmatmul.mubr.msk.bf16.gmra.mrb[4].mxu1 %vm487_vm1, %v1708_v45  ;;  %1604 = vmatprep.subr.bf16.mxu1 %v682_v49 }
 0x107   : > { %1605 = vmatpush3.bf16.msra.mxu1 %v682_v49  ;;  %1608 = vmatprep.mubr.msk.bf16.mxu1 %vm487_vm1, %v1709_v48 }
 0x108   : > { %1606 = vmatprep.subr.bf16.mxu1 %v683_v46  ;;  %v1622_v50 = vpop.f32.mrb[16].mxu0 }
 0x109   : > { %v848_v51 = vpop.f32.mrb[17].mxu0 }
 0x10a   : > { %v1623_v52 = vpop.f32.mrb[18].mxu0 }
 0x10b   : > { %v897_v54 = vpack.c.bf16 %v1623_v52, %v1622_v50  ;;  %1607 = vmatpush3.bf16.msra.mxu1 %v683_v46  ;;  %v851_v55 = vpop.f32.mrb[19].mxu0 }
 0x10c   : > { %v896_v57 = vpack.c.bf16 %v851_v55, %v848_v51 }
 0x10e   : > { %1609 = vmatmul.mubr.msk.bf16.vlgmr.msra.gmra.mrb[8].mxu1 %vm487_vm1, %v1710_v53  ;;  %1628 = vmatprep.subr.bf16.mxu1 %v896_v57 }
 0x10f   : > { %1629 = vmatpush3.bf16.msra.mxu1 %v896_v57  ;;  %1612 = vmatprep.mubr.msk.bf16.mxu1 %vm487_vm1, %v1711_v56 }
 0x110   : > { %v1626_v58 = vpop.f32.mrb[20].mxu0  ;;  %1630 = vmatprep.subr.bf16.mxu1 %v897_v54 }
 0x111   : > { %v864_v59 = vpop.f32.mrb[21].mxu0 }
 0x112   : > { %v1627_v60 = vpop.f32.mrb[22].mxu0 }
 0x113   : > { %v899_v62 = vpack.c.bf16 %v1627_v60, %v1626_v58  ;;  %v867_v63 = vpop.f32.mrb[23].mxu0  ;;  %1631 = vmatpush3.bf16.msra.mxu1 %v897_v54 }
 0x114   : > { %v898_v1 = vpack.c.bf16 %v867_v63, %v864_v59 }
 0x116   : > { %1613 = vmatmul.mubr.msk.bf16.gmra.mrb[12].mxu1 %vm487_vm1, %v1712_v61  ;;  %1632 = vmatprep.subr.bf16.mxu1 %v898_v1 }
 0x117   : > { %1633 = vmatpush3.bf16.msra.mxu1 %v898_v1  ;;  %1636 = vmatprep.mubr.msk.bf16.mxu1 %vm487_vm1, %v1713_v0 }
 0x118   : > { %1634 = vmatprep.subr.bf16.mxu1 %v899_v62  ;;  %v1650_v2 = vpop.f32.mrb[24].mxu0 }
 0x119   : > { %v1064_v3 = vpop.f32.mrb[25].mxu0 }
 0x11a   : > { %v1651_v4 = vpop.f32.mrb[26].mxu0 }
 0x11b   : > { %v1113_v6 = vpack.c.bf16 %v1651_v4, %v1650_v2  ;;  %1635 = vmatpush3.bf16.msra.mxu1 %v899_v62  ;;  %v1067_v7 = vpop.f32.mrb[27].mxu0 }
 0x11c   : > { %v1112_v9 = vpack.c.bf16 %v1067_v7, %v1064_v3 }
 0x11e   : > { %1637 = vmatmul.mubr.msk.bf16.vlgmr.msra.gmra.mrb[16].mxu1 %vm487_vm1, %v1714_v5  ;;  %1656 = vmatprep.subr.bf16.mxu1 %v1112_v9 }
 0x11f   : > { %1657 = vmatpush3.bf16.msra.mxu1 %v1112_v9  ;;  %1640 = vmatprep.mubr.msk.bf16.mxu1 %vm487_vm1, %v1715_v8 }
 0x120   : > { %v1654_v10 = vpop.f32.mrb[28].mxu0  ;;  %1658 = vmatprep.subr.bf16.mxu1 %v1113_v6 }
 0x121   : > { %v1080_v11 = vpop.f32.mrb[29].mxu0 }
 0x122   : > { %v1655_v12 = vpop.f32.mrb[30].mxu0 }
 0x123   : > { %v1115_v14 = vpack.c.bf16 %v1655_v12, %v1654_v10  ;;  %v1083_v15 = vpop.f32.mrb[31].mxu0  ;;  %1659 = vmatpush3.bf16.msra.mxu1 %v1113_v6 }
 0x124   : > { %v1114_v17 = vpack.c.bf16 %v1083_v15, %v1080_v11 }
 0x126   : > { %1641 = vmatmul.mubr.msk.bf16.gmra.mrb[20].mxu1 %vm487_vm1, %v1716_v13  ;;  %1660 = vmatprep.subr.bf16.mxu1 %v1114_v17 }
 0x127   : > { %1661 = vmatpush3.bf16.msra.mxu1 %v1114_v17  ;;  %1664 = vmatprep.mubr.msk.bf16.mxu1 %vm487_vm1, %v1717_v16 }
 0x128   : > { %1662 = vmatprep.subr.bf16.mxu1 %v1115_v14 }
 0x12b   : > { %1663 = vmatpush3.bf16.msra.mxu1 %v1115_v14 }
 0x12e   : > { %1665 = vmatmul.mubr.msk.bf16.vlgmr.msra.gmra.mrb[24].mxu1 %vm487_vm1, %v1718_v18 }
 0x12f   : > { %1668 = vmatprep.mubr.msk.bf16.mxu1 %vm487_vm1, %v1719_v19 }
 0x136   : > { %1669 = vmatmul.mubr.msk.bf16.gmra.mrb[28].mxu1 %vm487_vm1, %v1720_v20 }
 0x1d1   : > { %v1582_v23 = vpop.f32.mrb[0].mxu1 }
 0x1d2   : > { %v567_v25 = vadd.f32 %v1582_v23, %v449_v21  ;;  %v534_v26 = vpop.f32.mrb[1].mxu1 }
 0x1d3   : > { %v565_v28 = vadd.f32 %v534_v26, %v447_v22  ;;  %v1583_v29 = vpop.f32.mrb[2].mxu1 }
 0x1d4   : > { %575 = vst.msk [vmem:[#allocation2 + $0x10] sm:$0xff] %vm332_vm0, %v567_v25  ;;  %v568_v30 = vadd.f32 %v1583_v29, %v450_v24  ;;  %v537_v31 = vpop.f32.mrb[3].mxu1 }
 0x1d5   : > { %573 = vst.msk [vmem:[#allocation2] sm:$0xff] %vm332_vm0, %v565_v28  ;;  %v566_v32 = vadd.f32 %v537_v31, %v448_v27 }
 0x1d6   : > { %576 = vst.msk [vmem:[#allocation2 + $0x18] sm:$0xff] %vm332_vm0, %v568_v30 }
 0x1d7   : > { %574 = vst.msk [vmem:[#allocation2 + $0x8] sm:$0xff] %vm332_vm0, %v566_v32 }
 0x1d9   : > { %v1586_v35 = vpop.f32.mrb[4].mxu1 }
 0x1da   : > { %v571_v37 = vadd.f32 %v1586_v35, %v453_v33  ;;  %v550_v38 = vpop.f32.mrb[5].mxu1 }
 0x1db   : > { %v569_v40 = vadd.f32 %v550_v38, %v451_v34  ;;  %v1587_v41 = vpop.f32.mrb[6].mxu1  ;;  %v665_v45 = vld [vmem:[#allocation2 + $0x10] sm:$0xff] }
 0x1dc   : > { %579 = vst.msk [vmem:[#allocation2 + $0x30] sm:$0xff] %vm332_vm0, %v571_v37  ;;  %v572_v42 = vadd.f32 %v1587_v41, %v454_v36  ;;  %v553_v43 = vpop.f32.mrb[7].mxu1  ;;  %v663_v48 = vld [vmem:[#allocation2] sm:$0xff]  ;;  %v1234_v41 = vld [vmem:[%s1910_s22 + $0x10] sm:$0xff] }
 0x1dd   : > { %577 = vst.msk [vmem:[#allocation2 + $0x20] sm:$0xff] %vm332_vm0, %v569_v40  ;;  %v570_v44 = vadd.f32 %v553_v43, %v452_v39  ;;  %v666_v51 = vld [vmem:[#allocation2 + $0x18] sm:$0xff] }
 0x1de   : > { %580 = vst.msk [vmem:[#allocation2 + $0x38] sm:$0xff] %vm332_vm0, %v572_v42  ;;  %v664_v54 = vld [vmem:[#allocation2 + $0x8] sm:$0xff] }
 0x1df   : > { %578 = vst.msk [vmem:[#allocation2 + $0x28] sm:$0xff] %vm332_vm0, %v570_v44  ;;  %v1232_v44 = vld [vmem:[%s1910_s22] sm:$0xff] }
 0x1e1   : > { %v1610_v46 = vpop.f32.mrb[8].mxu1 }
 0x1e2   : > { %v783_v47 = vadd.f32 %v1610_v46, %v665_v45  ;;  %v750_v49 = vpop.f32.mrb[9].mxu1 }
 0x1e3   : > { %v781_v50 = vadd.f32 %v750_v49, %v663_v48  ;;  %v1611_v52 = vpop.f32.mrb[10].mxu1  ;;  %v669_v57 = vld [vmem:[#allocation2 + $0x30] sm:$0xff]  ;;  %v1235_v49 = vld [vmem:[%s1910_s22 + $0x18] sm:$0xff] }
 0x1e4   : > { %791 = vst.msk [vmem:[#allocation2 + $0x10] sm:$0xff] %vm332_vm0, %v783_v47  ;;  %v784_v53 = vadd.f32 %v1611_v52, %v666_v51  ;;  %v753_v55 = vpop.f32.mrb[11].mxu1  ;;  %v667_v60 = vld [vmem:[#allocation2 + $0x20] sm:$0xff] }
 0x1e5   : > { %789 = vst.msk [vmem:[#allocation2] sm:$0xff] %vm332_vm0, %v781_v50  ;;  %v782_v56 = vadd.f32 %v753_v55, %v664_v54  ;;  %v670_v63 = vld [vmem:[#allocation2 + $0x38] sm:$0xff]  ;;  %v1233_v55 = vld [vmem:[%s1910_s22 + $0x8] sm:$0xff] }
 0x1e6   : > { %792 = vst.msk [vmem:[#allocation2 + $0x18] sm:$0xff] %vm332_vm0, %v784_v53  ;;  %v668_v2 = vld [vmem:[#allocation2 + $0x28] sm:$0xff] }
 0x1e7   : > { %790 = vst.msk [vmem:[#allocation2 + $0x8] sm:$0xff] %vm332_vm0, %v782_v56 }
 0x1e9   : > { %v1614_v58 = vpop.f32.mrb[12].mxu1 }
 0x1ea   : > { %v787_v59 = vadd.f32 %v1614_v58, %v669_v57  ;;  %v766_v61 = vpop.f32.mrb[13].mxu1 }
 0x1eb   : > { %v785_v62 = vadd.f32 %v766_v61, %v667_v60  ;;  %v1615_v0 = vpop.f32.mrb[14].mxu1  ;;  %v881_v5 = vld [vmem:[#allocation2 + $0x10] sm:$0xff] }
 0x1ec   : > { %795 = vst.msk [vmem:[#allocation2 + $0x30] sm:$0xff] %vm332_vm0, %v787_v59  ;;  %v788_v1 = vadd.f32 %v1615_v0, %v670_v63  ;;  %v769_v3 = vpop.f32.mrb[15].mxu1  ;;  %v879_v8 = vld [vmem:[#allocation2] sm:$0xff] }
 0x1ed   : > { %793 = vst.msk [vmem:[#allocation2 + $0x20] sm:$0xff] %vm332_vm0, %v785_v62  ;;  %v786_v4 = vadd.f32 %v769_v3, %v668_v2  ;;  %v882_v11 = vld [vmem:[#allocation2 + $0x18] sm:$0xff]  ;;  %v1236_v2 = vld [vmem:[%s1910_s22 + $0x20] sm:$0xff] }
 0x1ee   : > { %796 = vst.msk [vmem:[#allocation2 + $0x38] sm:$0xff] %vm332_vm0, %v788_v1  ;;  %v880_v14 = vld [vmem:[#allocation2 + $0x8] sm:$0xff]  ;;  %v1238_v1 = vld [vmem:[%s1910_s22 + $0x30] sm:$0xff] }
 0x1ef   : > { %794 = vst.msk [vmem:[#allocation2 + $0x28] sm:$0xff] %vm332_vm0, %v786_v4  ;;  %v1239_v4 = vld [vmem:[%s1910_s22 + $0x38] sm:$0xff] }
 0x1f1   : > { %v1638_v6 = vpop.f32.mrb[16].mxu1 }
 0x1f2   : > { %v999_v7 = vadd.f32 %v1638_v6, %v881_v5  ;;  %v966_v9 = vpop.f32.mrb[17].mxu1 }
 0x1f3   : > { %v997_v10 = vadd.f32 %v966_v9, %v879_v8  ;;  %v1639_v12 = vpop.f32.mrb[18].mxu1  ;;  %v885_v17 = vld [vmem:[#allocation2 + $0x30] sm:$0xff] }
 0x1f4   : > { %1007 = vst.msk [vmem:[#allocation2 + $0x10] sm:$0xff] %vm332_vm0, %v999_v7  ;;  %v1000_v13 = vadd.f32 %v1639_v12, %v882_v11  ;;  %v969_v15 = vpop.f32.mrb[19].mxu1  ;;  %v883_v20 = vld [vmem:[#allocation2 + $0x20] sm:$0xff]  ;;  %v1237_v7 = vld [vmem:[%s1910_s22 + $0x28] sm:$0xff] }
 0x1f5   : > { %1005 = vst.msk [vmem:[#allocation2] sm:$0xff] %vm332_vm0, %v997_v10  ;;  %v998_v16 = vadd.f32 %v969_v15, %v880_v14  ;;  %v886_v23 = vld [vmem:[#allocation2 + $0x38] sm:$0xff] }
 0x1f6   : > { %1008 = vst.msk [vmem:[#allocation2 + $0x18] sm:$0xff] %vm332_vm0, %v1000_v13  ;;  %v884_v26 = vld [vmem:[#allocation2 + $0x28] sm:$0xff] }
 0x1f7   : > { %1006 = vst.msk [vmem:[#allocation2 + $0x8] sm:$0xff] %vm332_vm0, %v998_v16 }
 0x1f9   : > { %v1642_v18 = vpop.f32.mrb[20].mxu1 }
 0x1fa   : > { %v1003_v19 = vadd.f32 %v1642_v18, %v885_v17  ;;  %v982_v21 = vpop.f32.mrb[21].mxu1 }
 0x1fb   : > { %v1001_v22 = vadd.f32 %v982_v21, %v883_v20  ;;  %v1643_v24 = vpop.f32.mrb[22].mxu1  ;;  %v1097_v29 = vld [vmem:[#allocation2 + $0x10] sm:$0xff] }
 0x1fc   : > { %1011 = vst.msk [vmem:[#allocation2 + $0x30] sm:$0xff] %vm332_vm0, %v1003_v19  ;;  %v1004_v25 = vadd.f32 %v1643_v24, %v886_v23  ;;  %v985_v27 = vpop.f32.mrb[23].mxu1  ;;  %v1095_v32 = vld [vmem:[#allocation2] sm:$0xff] }
 0x1fd   : > { %1009 = vst.msk [vmem:[#allocation2 + $0x20] sm:$0xff] %vm332_vm0, %v1001_v22  ;;  %v1002_v28 = vadd.f32 %v985_v27, %v884_v26  ;;  %v1098_v35 = vld [vmem:[#allocation2 + $0x18] sm:$0xff] }
 0x1fe   : > { %1012 = vst.msk [vmem:[#allocation2 + $0x38] sm:$0xff] %vm332_vm0, %v1004_v25  ;;  %v1096_v38 = vld [vmem:[#allocation2 + $0x8] sm:$0xff] }
 0x1ff   : > { %1010 = vst.msk [vmem:[#allocation2 + $0x28] sm:$0xff] %vm332_vm0, %v1002_v28 }
 0x201   : > { %v1666_v30 = vpop.f32.mrb[24].mxu1 }
 0x202   : > { %v1215_v31 = vadd.f32 %v1666_v30, %v1097_v29  ;;  %v1182_v33 = vpop.f32.mrb[25].mxu1 }
 0x203   : > { %v1213_v34 = vadd.f32 %v1182_v33, %v1095_v32  ;;  %v1667_v36 = vpop.f32.mrb[26].mxu1  ;;  %v1101_v42 = vld [vmem:[#allocation2 + $0x30] sm:$0xff] }
 0x204   : > { %1223 = vst.msk [vmem:[#allocation2 + $0x10] sm:$0xff] %vm332_vm0, %v1215_v31  ;;  %v1216_v37 = vadd.f32 %v1667_v36, %v1098_v35  ;;  %v1185_v39 = vpop.f32.mrb[27].mxu1  ;;  %v1099_v46 = vld [vmem:[#allocation2 + $0x20] sm:$0xff] }
 0x205   : > { %1221 = vst.msk [vmem:[#allocation2] sm:$0xff] %vm332_vm0, %v1213_v34  ;;  %v1214_v40 = vadd.f32 %v1185_v39, %v1096_v38  ;;  %v1102_v51 = vld [vmem:[#allocation2 + $0x38] sm:$0xff] }
 0x206   : > { %1224 = vst.msk [vmem:[#allocation2 + $0x18] sm:$0xff] %vm332_vm0, %v1216_v37  ;;  %v1100_v57 = vld [vmem:[#allocation2 + $0x28] sm:$0xff] }
 0x207   : > { %1222 = vst.msk [vmem:[#allocation2 + $0x8] sm:$0xff] %vm332_vm0, %v1214_v40 }
 0x209   : > { %v1670_v43 = vpop.f32.mrb[28].mxu1 }
 0x20a   : > { %v1219_v45 = vadd.f32 %v1670_v43, %v1101_v42  ;;  %v1198_v47 = vpop.f32.mrb[29].mxu1 }
 0x20b   : > { %v1242_v48 = vld [vmem:[#allocation2 + $0x10] sm:$0xff]  ;;  %v1217_v50 = vadd.f32 %v1198_v47, %v1099_v46  ;;  %v1671_v52 = vpop.f32.mrb[30].mxu1 }
 0x20c   : > { %v1250_v53 = vadd.f32 %v1242_v48, %v1234_v41  ;;  %v1240_v54 = vld [vmem:[#allocation2] sm:$0xff]  ;;  %1227 = vst.msk [vmem:[#allocation2 + $0x30] sm:$0xff] %vm332_vm0, %v1219_v45  ;;  %v1220_v56 = vadd.f32 %v1671_v52, %v1102_v51  ;;  %v1201_v58 = vpop.f32.mrb[31].mxu1 }
 0x20d   : > { %v1248_v59 = vadd.f32 %v1240_v54, %v1232_v44  ;;  %v1243_v60 = vld [vmem:[#allocation2 + $0x18] sm:$0xff]  ;;  %1225 = vst.msk [vmem:[#allocation2 + $0x20] sm:$0xff] %vm332_vm0, %v1217_v50  ;;  %v1218_v61 = vadd.f32 %v1201_v58, %v1100_v57 }
 0x20e   : > { %1258 = vst.msk [vmem:[%s1920_s26 + $0x10] sm:$0xff] %vm332_vm0, %v1250_v53  ;;  %v1251_v62 = vadd.f32 %v1243_v60, %v1235_v49  ;;  %v1241_v63 = vld [vmem:[#allocation2 + $0x8] sm:$0xff]  ;;  %1228 = vst.msk [vmem:[#allocation2 + $0x38] sm:$0xff] %vm332_vm0, %v1220_v56 }
 0x20f   : > { %1256 = vst.msk [vmem:[%s1920_s26] sm:$0xff] %vm332_vm0, %v1248_v59  ;;  %v1249_v0 = vadd.f32 %v1241_v63, %v1233_v55  ;;  %1226 = vst.msk [vmem:[#allocation2 + $0x28] sm:$0xff] %vm332_vm0, %v1218_v61 }
 0x210   : > { %1259 = vst.msk [vmem:[%s1920_s26 + $0x18] sm:$0xff] %vm332_vm0, %v1251_v62 }
 0x211   : > { %1257 = vst.msk [vmem:[%s1920_s26 + $0x8] sm:$0xff] %vm332_vm0, %v1249_v0 }
 0x213   : > { %v1246_v3 = vld [vmem:[#allocation2 + $0x30] sm:$0xff] }
 0x214   : > { %v1254_v5 = vadd.f32 %v1246_v3, %v1238_v1  ;;  %v1244_v6 = vld [vmem:[#allocation2 + $0x20] sm:$0xff] }
 0x215   : > { %v1252_v8 = vadd.f32 %v1244_v6, %v1236_v2  ;;  %v1247_v9 = vld [vmem:[#allocation2 + $0x38] sm:$0xff] }
 0x216   : > { %1262 = vst.msk [vmem:[%s1920_s26 + $0x30] sm:$0xff] %vm332_vm0, %v1254_v5  ;;  %v1255_v10 = vadd.f32 %v1247_v9, %v1239_v4  ;;  %v1245_v11 = vld [vmem:[#allocation2 + $0x28] sm:$0xff] }
 0x217   : > { %1260 = vst.msk [vmem:[%s1920_s26 + $0x20] sm:$0xff] %vm332_vm0, %v1252_v8  ;;  %v1253_v12 = vadd.f32 %v1245_v11, %v1237_v7 }
 0x218   : > { %1263 = vst.msk [vmem:[%s1920_s26 + $0x38] sm:$0xff] %vm332_vm0, %v1255_v10 }
 0x219   : > { %1261 = vst.msk [vmem:[%s1920_s26 + $0x28] sm:$0xff] %vm332_vm0, %v1253_v12 }
 0x21a PF: > { %s14_s17 = sadd.s32 1, %s1743_s17   ;;  %s1962_s15 = smov %s1739_s16 }
 0x21b   : > { %p11_p5 = scmp.ge.s32.totalorder %s14_s17, 4   ;;  %s1963_s16 = smov %s1965_s18 }
 0x21d   :  { %13 = sbr.rel (!%p11_p5) target bundleno = 2 (0x2), region = 86 }

</bundles_post_ra>
